<compile_context>
chip_gen: v6e
topology: v6e:2x2x1
jax: 0.10.0
libtpu: 0.0.40
codegen_flags: <defaults>
</compile_context>

<pallas_src>
import math

import jax
import jax.numpy as jnp
from jax.experimental import pallas as pl
from jax.experimental.pallas import tpu as pltpu


def _round_up(x, m):
    return ((x + m - 1) // m) * m


def _logits_lse_kernel(x_ref, w_ref, b_ref, logits_ref, lse_ref, m_ref, l_ref):
    # x_ref: (tm, d_model)   w_ref: (d_model, tn)   b_ref: (1, tn) f32
    # logits_ref: (tm, tn) f32 unnormalized logits, written every (i, j) step
    # lse_ref: (tm, 128) f32 per-row logsumexp (lane-broadcast), written on the
    #          last vocab step (block index (i, 0) -> resident across j)
    # m_ref / l_ref: (tm, 1) f32 running max / running sum-of-exp
    j = pl.program_id(1)
    nj = pl.num_programs(1)

    @pl.when(j == 0)
    def _():
        m_ref[...] = jnp.full_like(m_ref, -jnp.inf)
        l_ref[...] = jnp.zeros_like(l_ref)

    # MXU matmul with f32 accumulation; bias add + softmax math in f32.
    logits = jnp.dot(x_ref[...], w_ref[...], preferred_element_type=jnp.float32)
    logits = logits + b_ref[...]

    # Lane-dense store of the raw logits tile straight to HBM-backed output.
    logits_ref[...] = logits

    # Online logsumexp update across vocab tiles.
    m_prev = m_ref[...]
    m_new = jnp.maximum(m_prev, jnp.max(logits, axis=-1, keepdims=True))
    l_ref[...] = (l_ref[...] * jnp.exp(m_prev - m_new)
                  + jnp.sum(jnp.exp(logits - m_new), axis=-1, keepdims=True))
    m_ref[...] = m_new

    @pl.when(j == nj - 1)
    def _():
        lse = m_ref[...] + jnp.log(l_ref[...])
        lse_ref[...] = jnp.broadcast_to(lse, lse_ref.shape)


def _normalize_kernel(logits_ref, lse_ref, o_ref):
    # logits_ref: (tm, tn) f32   lse_ref: (tm, 128) f32   o_ref: (tm, tn)
    o_ref[...] = (logits_ref[...] - lse_ref[:, 0:1]).astype(o_ref.dtype)


def generator_forward(x, w_t, b, *, tm=None, tn=None,
                      compute_dtype=jnp.bfloat16, out_dtype=None):
    """log_softmax(x @ w_t + b, axis=-1).

    x: [B, L, d_model], w_t: [d_model, vocab], b: [vocab] -> [B, L, vocab].

    tm: row tile (default 512: compute-bound weight stream on v6e/v7x; ~256 is
        enough on v5e).  tn: vocab tile (default 512, multiple of 128).
    compute_dtype: dtype fed to the MXU (default bfloat16); accumulation and
    all softmax math stay in f32.  out_dtype defaults to x.dtype.
    """
    B, L, d_model = x.shape
    assert w_t.shape[0] == d_model
    vocab = w_t.shape[1]
    assert b.shape == (vocab,)
    M = B * L

    out_dtype = x.dtype if out_dtype is None else out_dtype
    cbytes = jnp.dtype(compute_dtype).itemsize
    obytes = jnp.dtype(out_dtype).itemsize

    # ---- tile selection ----------------------------------------------------
    row_align = 16 if cbytes < 4 else 8
    if tm is None:
        tm = 512                       # amortizes the per-row-tile weight stream
    tm = int(min(tm, _round_up(M, row_align)))
    tm = _round_up(tm, row_align)
    M_pad = _round_up(M, tm)

    if tn is None:
        tn = 512                       # weight streamed in (d_model, tn) tiles
    tn = int(min(_round_up(tn, 128), _round_up(vocab, 128)))
    vocab_pad = _round_up(vocab, tn)
    n_vocab_tiles = vocab_pad // tn

    # ---- pad operands so arbitrary B*L / vocab work with large tiles -------
    x2d = x.reshape(M, d_model).astype(compute_dtype)
    if M_pad != M:
        x2d = jnp.pad(x2d, ((0, M_pad - M), (0, 0)))
    w2d = w_t.astype(compute_dtype)
    b2d = b.astype(jnp.float32).reshape(1, vocab)
    if vocab_pad != vocab:
        w2d = jnp.pad(w2d, ((0, 0), (0, vocab_pad - vocab)))
        # Very negative bias on padded columns: exp() == 0, never wins the max.
        b2d = jnp.pad(b2d, ((0, 0), (0, vocab_pad - vocab)),
                      constant_values=-1e30)

    # ---- pass 1: matmul + online logsumexp ----------------------------------
    est1 = (2 * tm * d_model * cbytes      # x tiles (double-buffered)
            + 2 * d_model * tn * cbytes    # weight tiles (double-buffered)
            + 2 * tn * 4                   # bias tiles
            + 2 * tm * tn * 4              # logits output tiles
            + 2 * tm * 128 * 4             # lse output block
            + 4 * tm * 4)                  # m / l scratch
    vmem1 = int(min(max(32 << 20, int(1.5 * est1) + (1 << 20)), 48 << 20))

    # NOTE: the weight BlockSpec is a candidate for pipeline_mode=pl.Buffered(3)
    # (sweep 2 vs 3) once profiled; kept at the default depth here.
    logits, lse = pl.pallas_call(
        _logits_lse_kernel,
        out_shape=(jax.ShapeDtypeStruct((M_pad, vocab_pad), jnp.float32),
                   jax.ShapeDtypeStruct((M_pad, 128), jnp.float32)),
        grid_spec=pltpu.PrefetchScalarGridSpec(
            num_scalar_prefetch=0,
            grid=(M_pad // tm, n_vocab_tiles),
            in_specs=[
                pl.BlockSpec((tm, d_model), lambda i, j: (i, 0)),   # activations
                pl.BlockSpec((d_model, tn), lambda i, j: (0, j)),   # weight tile
                pl.BlockSpec((1, tn), lambda i, j: (0, j)),         # bias tile
            ],
            out_specs=[
                pl.BlockSpec((tm, tn), lambda i, j: (i, j)),        # raw logits
                pl.BlockSpec((tm, 128), lambda i, j: (i, 0)),       # per-row lse
            ],
            scratch_shapes=[
                pltpu.VMEM((tm, 1), jnp.float32),                   # running max
                pltpu.VMEM((tm, 1), jnp.float32),                   # running sum
            ],
        ),
        compiler_params=pltpu.CompilerParams(
            dimension_semantics=("parallel", "arbitrary"),
            vmem_limit_bytes=vmem1,
        ),
    )(x2d, w2d, b2d)

    # ---- pass 2: subtract logsumexp (pure elementwise) ----------------------
    est2 = 2 * tm * tn * 4 + 2 * tm * 128 * 4 + 2 * tm * tn * obytes
    vmem2 = int(min(max(32 << 20, int(1.5 * est2) + (1 << 20)), 48 << 20))

    out = pl.pallas_call(
        _normalize_kernel,
        out_shape=jax.ShapeDtypeStruct((M_pad, vocab_pad), out_dtype),
        grid_spec=pltpu.PrefetchScalarGridSpec(
            num_scalar_prefetch=0,
            grid=(M_pad // tm, n_vocab_tiles),
            in_specs=[
                pl.BlockSpec((tm, tn), lambda i, j: (i, j)),
                pl.BlockSpec((tm, 128), lambda i, j: (i, 0)),
            ],
            out_specs=pl.BlockSpec((tm, tn), lambda i, j: (i, j)),
        ),
        compiler_params=pltpu.CompilerParams(
            dimension_semantics=("parallel", "parallel"),
            vmem_limit_bytes=vmem2,
        ),
    )(logits, lse)

    return out[:M, :vocab].reshape(B, L, vocab)


if __name__ == "__main__":
    # Small shapes consistent with the module (Linear(d_model, vocab) then
    # log_softmax), deliberately non-multiples of the tiles so row/vocab
    # padding and the multi-tile online logsumexp are exercised.
    B, L, d_model, vocab = 2, 13, 64, 300

    key = jax.random.PRNGKey(0)
    kx, kw, kb = jax.random.split(key, 3)

    # nn.Linear-style init: U(-1/sqrt(fan_in), 1/sqrt(fan_in)), PyTorch layout.
    bound = 1.0 / math.sqrt(d_model)
    w = jax.random.uniform(kw, (vocab, d_model), jnp.float32, -bound, bound)
    b = jax.random.uniform(kb, (vocab,), jnp.float32, -bound, bound)
    w_t = w.T  # [d_model, vocab] for the kernel

    x = jax.random.normal(kx, (B, L, d_model), jnp.float32)

    # Reference: F.log_softmax(x @ W.T + b, dim=-1), high-precision matmul.
    ref = jax.nn.log_softmax(
        jnp.einsum("bld,vd->blv", x, w,
                   precision=jax.lax.Precision.HIGHEST) + b, axis=-1)

    # 1) Small explicit tiles, f32 MXU inputs: multiple row tiles + row padding
    #    + multiple vocab tiles + vocab padding (exercises the online LSE).
    y = jax.block_until_ready(
        generator_forward(x, w_t, b, tm=16, tn=128,
                          compute_dtype=jnp.float32))
    assert y.shape == (B, L, vocab)
    assert jnp.allclose(y, ref, atol=1e-3, rtol=1e-3), \
        float(jnp.max(jnp.abs(y - ref)))

    # 2) Default tile selection, f32 MXU inputs (tiles capped to problem size).
    y2 = jax.block_until_ready(
        generator_forward(x, w_t, b, compute_dtype=jnp.float32))
    assert jnp.allclose(y2, ref, atol=1e-3, rtol=1e-3), \
        float(jnp.max(jnp.abs(y2 - ref)))

    # 3) Full default path: bf16 MXU inputs (f32 accumulation + f32 softmax),
    #    looser tolerance for bf16 input rounding.
    y3 = jax.block_until_ready(generator_forward(x, w_t, b))
    assert jnp.allclose(y3, ref, atol=5e-2, rtol=0), \
        float(jnp.max(jnp.abs(y3 - ref)))

    print("KERNEL_OK")
</pallas_src>

<mosaic_0001>
module attributes {stable_mosaic.version = 11 : i64} {
  func.func @_logits_lse_kernel(%arg0: i32, %arg1: i32, %arg2: memref<16x64xf32, #tpu.memory_space<vmem>>, %arg3: memref<64x128xf32, #tpu.memory_space<vmem>>, %arg4: memref<1x128xf32, #tpu.memory_space<vmem>>, %arg5: memref<16x128xf32, #tpu.memory_space<vmem>>, %arg6: memref<16x128xf32, #tpu.memory_space<vmem>>, %arg7: memref<16x1xf32, #tpu.memory_space<vmem>>, %arg8: memref<16x1xf32, #tpu.memory_space<vmem>>) attributes {dimension_semantics = [#tpu.dimension_semantics<parallel>, #tpu.dimension_semantics<arbitrary>], iteration_bounds = array<i64: 2, 3>, scalar_prefetch = 0 : i64, scratch_operands = 2 : i64, tpu.core_type = #tpu.core_type<tc>, window_params = [{transform_indices = @transform_0, window_bounds = array<i64: 16, 64>}, {transform_indices = @transform_1, window_bounds = array<i64: 64, 128>}, {transform_indices = @transform_2, window_bounds = array<i64: 1, 128>}, {transform_indices = @transform_3, window_bounds = array<i64: 16, 128>}, {transform_indices = @transform_4, window_bounds = array<i64: 16, 128>}]} {
    %c0_i32 = arith.constant 0 : i32
    %0 = arith.cmpi eq, %arg1, %c0_i32 : i32
    %1 = arith.extui %0 : i1 to i32
    %c0_i32_0 = arith.constant 0 : i32
    %2 = arith.cmpi ne, %1, %c0_i32_0 : i32
    scf.if %2 {
      %cst_19 = arith.constant 0xFF800000 : f32
      %29 = vector.broadcast %cst_19 : f32 to vector<16x1xf32>
      %c0_20 = arith.constant 0 : index
      %c0_21 = arith.constant 0 : index
      %30 = vector.load %arg7[%c0_20, %c0_21] : memref<16x1xf32, #tpu.memory_space<vmem>>, vector<16x1xf32>
      tpu.vector_store %arg7[%c0_20, %c0_21], %29 {strides = array<i32>} : memref<16x1xf32, #tpu.memory_space<vmem>>, vector<16x1xf32>,
      %cst_22 = arith.constant 0.000000e+00 : f32
      %31 = vector.broadcast %cst_22 : f32 to vector<16x1xf32>
      %c0_23 = arith.constant 0 : index
      %c0_24 = arith.constant 0 : index
      %32 = vector.load %arg8[%c0_23, %c0_24] : memref<16x1xf32, #tpu.memory_space<vmem>>, vector<16x1xf32>
      tpu.vector_store %arg8[%c0_23, %c0_24], %31 {strides = array<i32>} : memref<16x1xf32, #tpu.memory_space<vmem>>, vector<16x1xf32>,
    } else {
    }
    %c0 = arith.constant 0 : index
    %c0_1 = arith.constant 0 : index
    %3 = vector.load %arg2[%c0, %c0_1] : memref<16x64xf32, #tpu.memory_space<vmem>>, vector<16x64xf32>
    %c0_2 = arith.constant 0 : index
    %c0_3 = arith.constant 0 : index
    %4 = vector.load %arg3[%c0_2, %c0_3] : memref<64x128xf32, #tpu.memory_space<vmem>>, vector<64x128xf32>
    %cst = arith.constant dense<0.000000e+00> : vector<16x128xf32>
    %5 = tpu.matmul %3, %4, %cst {dimension_numbers = #tpu.dot_dimension_numbers<[1], [0], [0], [1], [0, 0, 1, 1], [], []>} : vector<16x64xf32>, vector<64x128xf32>, vector<16x128xf32> -> vector<16x128xf32>
    %c0_4 = arith.constant 0 : index
    %c0_5 = arith.constant 0 : index
    %6 = vector.load %arg4[%c0_4, %c0_5] : memref<1x128xf32, #tpu.memory_space<vmem>>, vector<1x128xf32>
    %7 = vector.broadcast %6 : vector<1x128xf32> to vector<16x128xf32>
    %8 = arith.addf %5, %7 : vector<16x128xf32>
    %c0_6 = arith.constant 0 : index
    %c0_7 = arith.constant 0 : index
    %9 = vector.load %arg5[%c0_6, %c0_7] : memref<16x128xf32, #tpu.memory_space<vmem>>, vector<16x128xf32>
    tpu.vector_store %arg5[%c0_6, %c0_7], %8 {strides = array<i32>} : memref<16x128xf32, #tpu.memory_space<vmem>>, vector<16x128xf32>,
    %c0_8 = arith.constant 0 : index
    %c0_9 = arith.constant 0 : index
    %10 = vector.load %arg7[%c0_8, %c0_9] : memref<16x1xf32, #tpu.memory_space<vmem>>, vector<16x1xf32>
    %cst_10 = arith.constant dense<0xFF800000> : vector<16xf32>
    %11 = vector.multi_reduction <maximumf>, %8, %cst_10 [1] : vector<16x128xf32> to vector<16xf32>
    %12 = vector.shape_cast %11 : vector<16xf32> to vector<16x1xf32>
    %13 = arith.maximumf %10, %12 : vector<16x1xf32>
    %c0_11 = arith.constant 0 : index
    %c0_12 = arith.constant 0 : index
    %14 = vector.load %arg8[%c0_11, %c0_12] : memref<16x1xf32, #tpu.memory_space<vmem>>, vector<16x1xf32>
    %15 = arith.subf %10, %13 : vector<16x1xf32>
    %16 = math.exp %15 : vector<16x1xf32>
    %17 = arith.mulf %14, %16 : vector<16x1xf32>
    %18 = vector.broadcast %13 : vector<16x1xf32> to vector<16x128xf32>
    %19 = arith.subf %8, %18 : vector<16x128xf32>
    %20 = math.exp %19 : vector<16x128xf32>
    %cst_13 = arith.constant dense<0.000000e+00> : vector<16xf32>
    %21 = vector.multi_reduction <add>, %20, %cst_13 [1] : vector<16x128xf32> to vector<16xf32>
    %22 = vector.shape_cast %21 : vector<16xf32> to vector<16x1xf32>
    %23 = arith.addf %17, %22 : vector<16x1xf32>
    %c0_14 = arith.constant 0 : index
    %c0_15 = arith.constant 0 : index
    %24 = vector.load %arg8[%c0_14, %c0_15] : memref<16x1xf32, #tpu.memory_space<vmem>>, vector<16x1xf32>
    tpu.vector_store %arg8[%c0_14, %c0_15], %23 {strides = array<i32>} : memref<16x1xf32, #tpu.memory_space<vmem>>, vector<16x1xf32>,
    %c0_16 = arith.constant 0 : index
    %c0_17 = arith.constant 0 : index
    %25 = vector.load %arg7[%c0_16, %c0_17] : memref<16x1xf32, #tpu.memory_space<vmem>>, vector<16x1xf32>
    tpu.vector_store %arg7[%c0_16, %c0_17], %13 {strides = array<i32>} : memref<16x1xf32, #tpu.memory_space<vmem>>, vector<16x1xf32>,
    %c2_i32 = arith.constant 2 : i32
    %26 = arith.cmpi eq, %arg1, %c2_i32 : i32
    %27 = arith.extui %26 : i1 to i32
    %c0_i32_18 = arith.constant 0 : i32
    %28 = arith.cmpi ne, %27, %c0_i32_18 : i32
    scf.if %28 {
      %c0_19 = arith.constant 0 : index
      %c0_20 = arith.constant 0 : index
      %29 = vector.load %arg7[%c0_19, %c0_20] : memref<16x1xf32, #tpu.memory_space<vmem>>, vector<16x1xf32>
      %c0_21 = arith.constant 0 : index
      %c0_22 = arith.constant 0 : index
      %30 = vector.load %arg8[%c0_21, %c0_22] : memref<16x1xf32, #tpu.memory_space<vmem>>, vector<16x1xf32>
      %31 = math.log %30 : vector<16x1xf32>
      %32 = arith.addf %29, %31 : vector<16x1xf32>
      %33 = vector.shape_cast %32 : vector<16x1xf32> to vector<16x1xf32>
      %34 = vector.broadcast %33 : vector<16x1xf32> to vector<16x128xf32>
      %c0_23 = arith.constant 0 : index
      %c0_24 = arith.constant 0 : index
      %35 = vector.load %arg6[%c0_23, %c0_24] : memref<16x128xf32, #tpu.memory_space<vmem>>, vector<16x128xf32>
      tpu.vector_store %arg6[%c0_23, %c0_24], %34 {strides = array<i32>} : memref<16x128xf32, #tpu.memory_space<vmem>>, vector<16x128xf32>,
    } else {
    }
    return
  }
  func.func @transform_0(%arg0: i32, %arg1: i32) -> (i32, i32) {
    %c0_i32 = arith.constant 0 : i32
    %c0_i32_0 = arith.constant 0 : i32
    return %arg0, %c0_i32 : i32, i32
  }
  func.func @transform_1(%arg0: i32, %arg1: i32) -> (i32, i32) {
    %c0_i32 = arith.constant 0 : i32
    %c0_i32_0 = arith.constant 0 : i32
    return %c0_i32, %arg1 : i32, i32
  }
  func.func @transform_2(%arg0: i32, %arg1: i32) -> (i32, i32) {
    %c0_i32 = arith.constant 0 : i32
    %c0_i32_0 = arith.constant 0 : i32
    return %c0_i32, %arg1 : i32, i32
  }
  func.func @transform_3(%arg0: i32, %arg1: i32) -> (i32, i32) {
    %c0_i32 = arith.constant 0 : i32
    return %arg0, %arg1 : i32, i32
  }
  func.func @transform_4(%arg0: i32, %arg1: i32) -> (i32, i32) {
    %c0_i32 = arith.constant 0 : i32
    %c0_i32_0 = arith.constant 0 : i32
    return %arg0, %c0_i32 : i32, i32
  }
}

</mosaic_0001>

<bundles_post_ra>
// kernel: tpu_custom_call.1
= control target key start
LH: loop header
LB: loop body
LE: loop exit
PB: predicated region body
PF: predicated region fallthrough
CT: control target
= control target key end

     0   :  { %s1550_s0 = inlined_call_operand.hbm [shape: f32[32,64], index: 0, kind: input, shape index: {}]   ;;  %s1551_s1 = inlined_call_operand.hbm [shape: f32[64,384], index: 1, kind: input, shape index: {}]   ;;  %s1552_s2 = inlined_call_operand.vmem [shape: f32[1,384], index: 2, kind: input, shape index: {}]   ;;  %s1553_s3 = inlined_call_operand.hbm [shape: f32[32,384], index: 3, kind: output, shape index: {0}]   ;;  %s1554_s4 = inlined_call_operand.hbm [shape: f32[32,128], index: 4, kind: output, shape index: {1}]  }
   0x1   :  { %1575 = sst [smem:[#allocation26_spill]] %s1550_s0 }
   0x2   :  { %1576 = sst [smem:[#allocation27_spill]] %s1551_s1 }
   0x3   :  { %1577 = sst [smem:[#allocation28_spill]] %s1552_s2 }
   0x4   :  { %1578 = sst [smem:[#allocation29_spill]] %s1553_s3 }
   0x5   :  { %1579 = sst [smem:[#allocation30_spill]] %s1554_s4 }
   0x6   :  { %10 = vsyncpa [#allocation5], 0 }
   0x7   :  { %12 = vsyncpa [#allocation5 + $0x1], 0 }
   0x8   :  { %13 = vsyncpa [#allocation8], 0 }
   0x9   :  { %15 = vsyncpa [#allocation8 + $0x1], 0 }
   0xa   :  { %16 = vsyncpa [#allocation6], 0 }
   0xb   :  { %18 = vsyncpa [#allocation6 + $0x1], 0 }
   0xc   :  { %19 = vsyncpa [#allocation11], 0 }
   0xd   :  { %21 = vsyncpa [#allocation11 + $0x1], 0  ;;  %s1161_s15 = smov 0   ;;  %s1163_s16 = smov 0  }
   0xe   :  { %s1165_s17 = smov 0   ;;  %s1167_s18 = smov 0  }
   0xf   :  { %s1169_s19 = smov 0   ;;  %s1171_s20 = smov 0  }
  0x10   :  { %s1173_s21 = smov 0   ;;  %s1175_s22 = smov 0  }
  0x11   :  { %s1177_s23 = smov 0   ;;  %s1179_s24 = smov 0  }
  0x12   :  { %s1181_s25 = smov 0   ;;  %s1183_s26 = smov 0  }
  0x13   :  { %s1185_s27 = smov 0   ;;  %s1187_s28 = smov 0  }
  0x14 LB: > { %1580 = sst [smem:[#allocation16_spill]] %s1068_s15  ;;  %s665_s29 = sadd.s32 4294967295, %s1120_s28   ;;  %s1120_s28 = sphi %s1187_s28, %s27_s28   ;;  %s1116_s27 = sphi %s1185_s27, %s1643_s27   ;;  %s1112_s26 = sphi %s1183_s26, %s1642_s26   ;;  %s1108_s25 = sphi %s1181_s25, %s1641_s25   ;;  %s1104_s24 = sphi %s1179_s24, %s1640_s24   ;;  %s1100_s23 = sphi %s1177_s23, %s1639_s23   ;;  %s1096_s22 = sphi %s1175_s22, %s1638_s22   ;;  %s1092_s21 = sphi %s1173_s21, %s1637_s21   ;;  %s1088_s20 = sphi %s1171_s20, %s1636_s20   ;;  %s1084_s19 = sphi %s1169_s19, %s1635_s19   ;;  %s1080_s18 = sphi %s1167_s18, %s1634_s18   ;;  %s1076_s17 = sphi %s1165_s17, %s1633_s17   ;;  %s1072_s16 = sphi %s1163_s16, %s1632_s16   ;;  %s1068_s15 = sphi %s1161_s15, %s1630_s15  }
  0x15   : > { %1581 = sst [smem:[#allocation17_spill]] %s1072_s16  ;;  %s666_s30 = sadd.s32 4294967294, %s1120_s28  }
  0x16   : > { %1582 = sst [smem:[#allocation18_spill]] %s1092_s21  ;;  %p53_p0 = scmp.ne.s32.totalorder %s1100_s23, %s1096_s22 }
  0x17   : > { %1583 = sst [smem:[#allocation19_spill]] %s1104_s24  ;;  %p1555_p1 = scmp.eq.s32.totalorder %s1120_s28, 0 }
  0x18   : > { %1584 = sst [smem:[#allocation20_spill]] %s1108_s25  ;;  %p59_p2 = scmp.ne.s32.totalorder %s1096_s22, %s1092_s21 }
  0x19   : > { %p1240_p3 = scmp.eq.s32.totalorder %s665_s29, 0  ;;  %p1246_p4 = por %p1555_p1, %p53_p0 }
  0x1a   : > { %p136_p5 = scmp.ne.s32.totalorder %s1076_s17, %s1072_s16  ;;  %p137_p7 = scmp.eq.s32.totalorder %s665_s29, 5 }
  0x1b   : > { %p1254_p6 = por %p1240_p3, %p59_p2  ;;  %p142_p8 = scmp.ne.s32.totalorder %s1072_s16, %s1068_s15 }
  0x1c   : > { %p143_p9 = scmp.eq.s32.totalorder %s666_s30, 5  ;;  %p1260_p10 = por %p137_p7, %p136_p5 }
  0x1d   : > { %p1264_p11 = por %p137_p7, %p53_p0  ;;  %p747_p1 = scmp.lt.s32.totalorder %s1120_s28, 6 }
  0x1e   : > { %s1588_s10 = scalar_select %p1260_p10, 1, 0 }
  0x1f   : > { %s1590_s11 = scalar_select %p1264_p11, 1, 0 }
  0x20   : > { %1589 = sst [smem:[#allocation21_spill]] %s1588_s10  ;;  %p1268_p12 = por %p143_p9, %p142_p8 }
  0x21   : > { %1591 = sst [smem:[#allocation22_spill]] %s1590_s11  ;;  %p1272_p13 = por %p143_p9, %p59_p2 }
  0x22   : > { %s1592_s12 = scalar_select %p1268_p12, 1, 0 }
  0x23   : > { %s1594_s13 = scalar_select %p1272_p13, 1, 0 }
  0x24   : > { %1593 = sst [smem:[#allocation23_spill]] %s1592_s12  ;;  %s189_s14 = sand.u32 1, %s1100_s23  }
  0x25   : > { %1595 = sst [smem:[#allocation24_spill]] %s1594_s13  ;;  %s693_s29 = sshll.u32 %s1116_s27, 8 }
  0x26   : > { %s669_s30 = sshll.u32 %s189_s14, 4  ;;  %s1596_s0 = sld [smem:[#allocation26_spill]] }
  0x27   : > { %s193_s15 = scalar_lea.vmem [#allocation4], %s669_s30  ;;  %p1286_p0 = pnand %p747_p1, %p1246_p4 }
  0x28   : > { %s200_s4 = sshll.u32 %s193_s15, 4  ;;  %s190_s12 = scalar_lea.sflag [#allocation5], %s189_s14  ;;  %s201_s4 = int_to_ptr.vmem [resolvable:$true] %s200_s4 }
  0x29   : > { %p888_p2 = pneg %p1286_p0  ;;  %s899_s13 = scalar_lea.vmem %s201_s4, 256 }
  0x2a   : > { %p900_p5 = scmp.ne.s32.totalorder %s201_s4, %s899_s13  ;;  %s1122_s3 = smov [#allocation4]  }
  0x2b   : > { %s904_s5 = sshll.u32 %s1122_s3, 4  ;;  %s905_s5 = int_to_ptr.vmem [resolvable:$false] %s904_s5 }
  0x2c   : > { %s199_s21 = scalar_lea.hbm %s1596_s0, %s693_s29  ;;  %p902_p7 = pnand %p900_p5, %p888_p2 }
  0x2d   : > { %s906_s6 = scalar_lea.vmem %s905_s5, 512  ;;  %p907_p9 = scmp.lt.s32.totalorder %s201_s4, %s905_s5 }
  0x2e   : > { %p903_p8 = pneg %p902_p7  ;;  %p908_p13 = scmp.lt.s32.totalorder %s906_s6, %s899_s13 }
  0x30   : > { %p909_p12 = por %p908_p13, %p907_p9 }
  0x32   : > { %p910_p4 = pnand %p909_p12, %p903_p8 }
  0x34   : > { %913 = shalt.err (!%p910_p4)
}
  0x35   : > { %s1564_s15 = smov 128   ;;  %s1565_s3 = smov 8  }
  0x36   : > { %736 = dma.hbm_to_vmem [thread:$0]  (!%p1286_p0), %s199_s21, 256, %s201_s4, %s190_s12, %s1564_s15, %s1564_s15, %s1565_s3  }
  0x37   : > { %p674_p12 = scmp.ge.s32.totalorder %s1120_s28, 1  ;;  %p234_p13 = scmp.lt.s32.totalorder %s1120_s28, 7 }
  0x38   : > { %s36_s13 = sadd.s32 1, %s1112_s26  ;;  %s72_s14 = sadd.s32 1, %s1088_s20 }
  0x39   : > { %p1299_p2 = pnand %p674_p12, %p234_p13  ;;  %p37_p5 = scmp.ge.s32.totalorder %s36_s13, 3 }
  0x3a   : > { %p79_p7 = scmp.ne.s32.totalorder %s1088_s20, %s1084_s19  ;;  %p85_p8 = scmp.ne.s32.totalorder %s1084_s19, %s1080_s18 }
  0x3b   : > { %s1645_s13 = smov (%p37_p5, %s36_s13), 0  ;;  %s1600_s4 = sadd.s32 1, %s1116_s27 }
  0x3c   : > { %1599 = sst [smem:[#allocation25_spill]] %s1645_s13  ;;  %s1647_s4 = smov (!%p37_p5, %s1600_s4), %s1116_s27 }
  0x3d   : > { %s69_s21 = ssub.s32 %s1112_s26, %s1645_s13  ;;  %p1601_p0 = scmp.eq.s32.totalorder %s1120_s28, 0 }
  0x3e   : > { %p41_p4 = scmp.ge.s32.totalorder %s1647_s4, 2  ;;  %p70_p12 = scmp.eq.s32.totalorder %s69_s21, 0 }
  0x3f   : > { %p1318_p9 = por %p79_p7, %p1601_p0  ;;  %p1324_p13 = por %p85_p8, %p1240_p3 }
  0x40   : > { %s126_s12 = sadd.s32 1, %s1076_s17  ;;  %s1649_s4 = smov (%p41_p4, %s1647_s4), 0 }
  0x41   : > { %s1332_s29 = scalar_select %p70_p12, %s1088_s20, %s72_s14  }
  0x42   : > { %s43_s30 = ssub.s32 %s1116_s27, %s1649_s4  ;;  %s210_s5 = sand.u32 1, %s1088_s20  }
  0x43   : > { %p44_p5 = scmp.eq.s32.totalorder %s43_s30, 0  ;;  %s123_s6 = sor.u32 %s69_s21, %s43_s30 }
  0x44   : > { %p124_p7 = scmp.eq.s32.totalorder %s123_s6, 0  ;;  %s1604_s15 = sadd.s32 1, %s1100_s23 }
  0x45   : > { %s1340_s3 = scalar_select %p44_p5, %s1100_s23, %s1604_s15  }
  0x46   : > { %s1343_s7 = scalar_select %p124_p7, %s1076_s17, %s126_s12  }
  0x47   : > { %s672_s0 = sshll.u32 %s210_s5, 6  ;;  %s673_s13 = sshll.u32 %s1112_s26, 7 }
  0x48   : > { %s1605_s1 = sld [smem:[#allocation27_spill]]  ;;  %s214_s24 = scalar_lea.vmem [#allocation7], %s672_s0 }
  0x49   : > { %s220_s16 = sshll.u32 %s214_s24, 4  ;;  %p1353_p3 = pnand %p747_p1, %p1318_p9  ;;  %s221_s16 = int_to_ptr.vmem [resolvable:$true] %s220_s16 }
  0x4a   : > { %s211_s15 = scalar_lea.sflag [#allocation8], %s210_s5  ;;  %s927_s21 = scalar_lea.vmem %s221_s16, 1024 }
  0x4b   : > { %p916_p8 = pneg %p1353_p3  ;;  %p928_p0 = scmp.ne.s32.totalorder %s221_s16, %s927_s21 }
  0x4c   : > { %s1125_s12 = smov [#allocation7]  }
  0x4d   : > { %p930_p4 = pnand %p928_p0, %p916_p8  ;;  %s932_s25 = sshll.u32 %s1125_s12, 4  ;;  %s933_s25 = int_to_ptr.vmem [resolvable:$false] %s932_s25 }
  0x4e   : > { %s219_s2 = scalar_lea.hbm %s1605_s1, %s673_s13  ;;  %s934_s0 = scalar_lea.vmem %s933_s25, 2048 }
  0x4f   : > { %p931_p12 = pneg %p930_p4  ;;  %p935_p5 = scmp.lt.s32.totalorder %s221_s16, %s933_s25 }
  0x50   : > { %p936_p7 = scmp.lt.s32.totalorder %s934_s0, %s927_s21 }
  0x52   : > { %p937_p11 = por %p936_p7, %p935_p5 }
  0x54   : > { %p938_p1 = pnand %p937_p11, %p931_p12 }
  0x56   : > { %941 = shalt.err (!%p938_p1)
}
  0x57   : > { %s1126_s24 = smov 384   ;;  %s1607_s10 = smov 8  }
  0x58   : > { %s1608_s13 = smov 128   ;;  %238 = sbr.rel (%p1299_p2) target bundleno = 963 (0x3c3), region = 32 }
  0x59   : > { %739 = dma.hbm_to_vmem [thread:$0]  (!%p1353_p3), %s219_s2, 1024, %s221_s16, %s211_s15, %s1126_s24, %s1608_s13, %s1607_s10  }
  0x5a   : > { %s1366_s11 = sand.u32 (!%p1299_p2), 1, %s1096_s22  }
  0x5b   : > { %s675_s30 = sshll.u32 (!%p1299_p2), %s1366_s11, 4  ;;  %s241_s5 = scalar_lea.sflag (!%p1299_p2), [#allocation5], %s1366_s11 }
  0x5c   : > { %s1370_s6 = scalar_lea.vmem (!%p1299_p2), [#allocation4], %s675_s30 }
  0x5d   : > { %1051 = dma.done.wait (%p1254_p6), %s241_s5, 256  }
  0x5e   : > { %1053 = vsyncadd (%p1254_p6), %s241_s5, 4294967040  ;;  %s249_s2 = sand.u32 1, %s1084_s19  }
  0x5f   : > { %s676_s16 = sshll.u32 %s249_s2, 6  ;;  %s250_s8 = scalar_lea.sflag [#allocation8], %s249_s2 }
  0x60   : > { %s1377_s14 = scalar_lea.vmem [#allocation7], %s676_s16 }
  0x61   : > { %1055 = dma.done.wait (%p1324_p13), %s250_s8, 1024  }
  0x62   : > { %1057 = vsyncadd (%p1324_p13), %s250_s8, 4294966272  ;;  %s1609_s15 = sld [smem:[#allocation17_spill]]  ;;  %s1396_s2 = scalar_lea.vmem [#allocation10], %s675_s30 }
  0x63   : > { %s1610_s21 = sld [smem:[#allocation19_spill]] }
  0x64   : > { %s1611_s10 = sld [smem:[#allocation28_spill]] }
  0x68   : > { %s281_s12 = sand.u32 1, %s1609_s15  }
  0x69   : > { %s677_s9 = sshll.u32 %s281_s12, 4  ;;  %p292_p6 = scmp.lt.s32.totalorder %s1610_s21, 2 }
  0x6a   : > { %s1394_s5 = scalar_lea.vmem [#allocation9], %s677_s9  ;;  %p679_p11 = scmp.ne.s32.totalorder %s1610_s21, 0 }
  0x6b   : > { %s1388_s25 = scalar_select %p292_p6, %s1610_s21, 2 }
  0x6c   : > { %300 = sbr.rel (%p679_p11) target bundleno = 116 (0x74), region = 44 }
  0x6d   : > { %s294_s13 = scalar_lea.vmem %s1611_s10, %s1388_s25 }
  0x71   : > { %vm301_vm0 = vcmask 7168   ;;  %v1127_v0 = vmov -inf   ;;  %v1128_v1 = vmov 0.0  }
  0x72   : > { %302 = vst.msk [vmem:[#allocation2] sm:$0xff] %vm301_vm0, %v1127_v0  ;;  %303 = vst.msk [vmem:[#allocation2 + $0x8] sm:$0xff] %vm301_vm0, %v1127_v0 }
  0x73   : > { %304 = vst.msk [vmem:[#allocation3] sm:$0xff] %vm301_vm0, %v1128_v1  ;;  %305 = vst.msk [vmem:[#allocation3 + $0x8] sm:$0xff] %vm301_vm0, %v1128_v1 }
  0x74 PF: > { %v315_v2 = vld [vmem:[%s1377_s14 + $0x38] sm:$0xff]  ;;  %v314_v3 = vld [vmem:[%s1377_s14 + $0x30] sm:$0xff]  ;;  %vm323_vm1 = vcmask 523264   ;;  %v313_v4 = vld [vmem:[%s1377_s14 + $0x28] sm:$0xff]  ;;  %v1129_v17 = vmov 0   ;;  %vm447_vm2 = vcmask 7168  }
  0x75   : > { %705 = vmatprep.subr.mxu0 %v315_v2  ;;  %v306_v5 = vld [vmem:[%s1370_s6] sm:$0xff]  ;;  %v311_v7 = vld [vmem:[%s1377_s14 + $0x18] sm:$0xff]  ;;  %v309_v9 = vld [vmem:[%s1377_s14 + $0x8] sm:$0xff]  ;;  %871 = vset.pattern.permute.xlu1 %v1129_v17 }
  0x76   : > { %706 = vmatpush3.msra.mxu0 %v315_v2  ;;  %721 = vmatprep.mubr.msk.f32.mxu0 %vm323_vm1, %v306_v5  ;;  %v312_v6 = vld [vmem:[%s1377_s14 + $0x20] sm:$0xff]  ;;  %v310_v8 = vld [vmem:[%s1377_s14 + $0x10] sm:$0xff]  ;;  %v307_v11 = vld [vmem:[%s1370_s6 + $0x8] sm:$0xff]  ;;  %s1613_s6 = sld [smem:[#allocation19_spill]] }
  0x77   : > { %707 = vmatprep.subr.mxu0 %v314_v3  ;;  %v308_v10 = vld [vmem:[%s1377_s14] sm:$0xff]  ;;  %872 = vset.pattern.permute.xlu0 %v1129_v17 }
  0x78   : > { %708 = vmatpush3.msra.mxu0 %v314_v3  ;;  %v680_v12 = vld [vmem:[%s294_s13] ss:$0 sm:$0xff] }
  0x79   : > { %709 = vmatprep.subr.mxu0 %v313_v4  ;;  %v407_v18 = vld [vmem:[#allocation2] sm:$0xff]  ;;  %v408_v21 = vld [vmem:[#allocation2 + $0x8] sm:$0xff] }
  0x7a   : > { %710 = vmatpush3.msra.mxu0 %v313_v4  ;;  %v415_v37 = vld [vmem:[#allocation3] sm:$0xff]  ;;  %v416_v41 = vld [vmem:[#allocation3 + $0x8] sm:$0xff] }
  0x7b   : > { %711 = vmatprep.subr.mxu0 %v312_v6 }
  0x7c   : > { %712 = vmatpush3.msra.mxu0 %v312_v6  ;;  %p683_p2 = scmp.ne.s32.totalorder %s1613_s6, 2 }
  0x7d   : > { %713 = vmatprep.subr.mxu0 %v311_v7 }
  0x7e   : > { %714 = vmatpush3.msra.mxu0 %v311_v7 }
  0x7f   : > { %715 = vmatprep.subr.mxu0 %v310_v8 }
  0x80   : > { %716 = vmatpush3.msra.mxu0 %v310_v8 }
  0x81   : > { %717 = vmatprep.subr.mxu0 %v309_v9 }
  0x82   : > { %718 = vmatpush3.msra.mxu0 %v309_v9 }
  0x83   : > { %719 = vmatprep.subr.mxu0 %v308_v10 }
  0x84   : > { %720 = vmatpush3.msra.mxu0 %v308_v10 }
  0x85   : > { %722 = vmatmul.mubr.msk.f32.vlgmr.msra.gmra.mxu0 %vm323_vm1, %v307_v11 }
 0x145   : > { %v723_v13 = vpop.f32.mrf.mxu0 }
 0x146   : > { %v402_v14 = vadd.f32 %v723_v13, %v680_v12 }
 0x147   : > { %v396_v15 = vpop.f32.mrf.mxu0 }
 0x148   : > { %406 = vst [vmem:[%s1394_s5 + $0x8] sm:$0xff] %v402_v14  ;;  %v397_v16 = vadd.f32 %v680_v12, %v396_v15 }
 0x14a   : > { %405 = vst [vmem:[%s1394_s5] sm:$0xff] %v397_v16  ;;  %409 = vmax.xlane.f32.xlu0 %v397_v16 }
 0x14e   : > { %411 = vmax.xlane.f32.xlu0 %v402_v14 }
 0x1d3   : > { %v410_v19 = vpop.xlane.xlu0 %409 }
 0x1d4   : > { %v413_v20 = vmax.f32 %v407_v18, %v410_v19 }
 0x1d6   : > { %v417_v22 = vsub.f32 %v407_v18, %v413_v20  ;;  %450 = vst.msk [vmem:[#allocation2] sm:$0xff] %vm447_vm2, %v413_v20  ;;  %427 = vperm.xlu1 %871, %v413_v20  }
 0x1d7   : > { %v412_v23 = vpop.xlane.xlu0 %411 }
 0x1d8   : > { %v414_v24 = vmax.f32 %v408_v21, %v412_v23  ;;  %v419_v34 = vmul.f32 1.442695, %v417_v22 }
 0x1da   : > { %v418_v25 = vsub.f32 %v408_v21, %v414_v24  ;;  %451 = vst.msk [vmem:[#allocation2 + $0x8] sm:$0xff] %vm447_vm2, %v414_v24  ;;  %432 = vperm.xlu1 %871, %v414_v24  }
 0x1dc   : > { %v421_v35 = vmul.f32 1.442695, %v418_v25 }
 0x251   : > { %v428_v26 = vpop.permute.xlu1 %427 }
 0x252   : > { %v435_v27 = vsub.f32 %v397_v16, %v428_v26 }
 0x254   : > { %v437_v28 = vmul.f32 1.442695, %v435_v27 }
 0x255   : > { %v433_v29 = vpop.permute.xlu1 %432 }
 0x256   : > { %873 = vpow2.f32 %v437_v28  ;;  %v436_v30 = vsub.f32 %v402_v14, %v433_v29 }
 0x258   : > { %v439_v31 = vmul.f32 1.442695, %v436_v30 }
 0x25a   : > { %875 = vpow2.f32 %v439_v31 }
 0x25b   : > { %877 = vpow2.f32 %v419_v34 }
 0x25c   : > { %879 = vpow2.f32 %v421_v35 }
 0x263   : > { %v874_v32 = vpop.eup %873 }
 0x264   : > { %441 = vadd.xlane.f32.xlu0 %v874_v32 }
 0x267   : > { %v876_v33 = vpop.eup %875 }
 0x268   : > { %443 = vadd.xlane.f32.xlu1 %v876_v33  ;;  %v878_v36 = vpop.eup %877 }
 0x269   : > { %v423_v38 = vmul.f32 %v878_v36, %v415_v37  ;;  %v880_v39 = vpop.eup %879 }
 0x26a   : > { %v424_v43 = vmul.f32 %v880_v39, %v416_v41 }
 0x2ed   : > { %v442_v40 = vpop.xlane.xlu0 %441 }
 0x2ee   : > { %v445_v42 = vadd.f32 %v442_v40, %v423_v38 }
 0x2f0   : > { %448 = vst.msk [vmem:[#allocation3] sm:$0xff] %vm447_vm2, %v445_v42  ;;  %455 = sbr.rel (%p683_p2) target bundleno = 907 (0x38b), region = 48 }
 0x2f1   : > { %v444_v44 = vpop.xlane.xlu1 %443 }
 0x2f2   : > { %v446_v45 = vadd.f32 %v444_v44, %v424_v43 }
 0x2f4   : > { %449 = vst.msk [vmem:[#allocation3 + $0x8] sm:$0xff] %vm447_vm2, %v446_v45 }
 0x2f5   : > { %v1130_v47 = vmov 0   ;;  %v456_v50 = vld [vmem:[#allocation2] sm:$0xff]  ;;  %v457_v53 = vld [vmem:[#allocation2 + $0x8] sm:$0xff] }
 0x2f6   : > { %881 = vset.pattern.permute.xlu0 %v1130_v47 }
 0x2f7   : > { %v458_v46 = vld [vmem:[#allocation3] sm:$0xff] }
 0x2f8   : > { %882 = vlog2.f32 %v458_v46 }
 0x2fb   : > { %v459_v48 = vld [vmem:[#allocation3 + $0x8] sm:$0xff] }
 0x2fc   : > { %884 = vlog2.f32 %v459_v48 }
 0x305   : > { %v883_v49 = vpop.eup %882 }
 0x306   : > { %v461_v52 = vmul.f32 0.6931472, %v883_v49 }
 0x308   : > { %v464_v55 = vadd.f32 %v461_v52, %v456_v50 }
 0x309   : > { %v885_v51 = vpop.eup %884 }
 0x30a   : > { %v463_v54 = vmul.f32 0.6931472, %v885_v51  ;;  %468 = vperm.xlu0 %881, %v464_v55  }
 0x30c   : > { %v465_v56 = vadd.f32 %v463_v54, %v457_v53 }
 0x30e   : > { %473 = vperm.xlu0 %881, %v465_v56  }
 0x385   : > { %v469_v57 = vpop.permute.xlu0 %468 }
 0x386   : > { %476 = vst [vmem:[%s1396_s2] sm:$0xff] %v469_v57 }
 0x389   : > { %v474_v58 = vpop.permute.xlu0 %473 }
 0x38a   : > { %477 = vst [vmem:[%s1396_s2 + $0x8] sm:$0xff] %v474_v58 }
 0x38b PF: > { %s1614_s8 = sld [smem:[#allocation20_spill]]  ;;  %s499_s25 = sshll.u32 %s1394_s5, 4  ;;  %s1428_s25 = int_to_ptr.vmem [resolvable:$true] %s499_s25 }
 0x38c   : > { %s1615_s14 = sld [smem:[#allocation19_spill]]  ;;  %s1437_s6 = scalar_lea.sflag [#allocation6], %s281_s12 }
 0x38d   : > { %s1618_s18 = sld [smem:[#allocation29_spill]]  ;;  %s942_s1 = scalar_lea.vmem %s1428_s25, 256 }
 0x38e   : > { %p943_p9 = scmp.ne.s32.totalorder %s1428_s25, %s942_s1  ;;  %s1131_s5 = smov [#allocation9]  }
 0x390   : > { %p944_p13 = pnand %p943_p9, %p1260_p10 }
 0x391   : > { %s724_s9 = smul.u32 6, %s1614_s8 }
 0x392   : > { %p945_p3 = pneg %p944_p13 }
 0x393   : > { %s496_s0 = sadd.s32 %s1615_s14, %s724_s9  ;;  %s1619_s30 = smov %s1618_s18 }
 0x394   : > { %s688_s24 = sshll.u32 %s496_s0, 7  ;;  %s946_s14 = sshll.u32 %s1131_s5, 4  ;;  %s947_s14 = int_to_ptr.vmem [resolvable:$false] %s946_s14 }
 0x395   : > { %s1433_s16 = scalar_lea.hbm %s1618_s18, %s688_s24  ;;  %s948_s9 = scalar_lea.vmem %s947_s14, 512 }
 0x396   : > { %p949_p8 = scmp.lt.s32.totalorder %s1428_s25, %s947_s14  ;;  %p950_p0 = scmp.lt.s32.totalorder %s948_s9, %s942_s1 }
 0x398   : > { %p951_p4 = por %p950_p0, %p949_p8 }
 0x39a   : > { %p952_p12 = pnand %p951_p4, %p945_p3 }
 0x39c   : > { %955 = shalt.err (!%p952_p12)
}
 0x39d   : > { %s956_s12 = scalar_lea.hbm %s1433_s16, 256  ;;  %s960_s24 = scalar_lea.hbm %s1619_s30, 1536 }
 0x39e   : > { %p957_p5 = scmp.ne.s32.totalorder %s1433_s16, %s956_s12  ;;  %p961_p6 = scmp.lt.s32.totalorder %s1433_s16, %s1619_s30 }
 0x39f   : > { %p962_p11 = scmp.lt.s32.totalorder %s960_s24, %s956_s12 }
 0x3a0   : > { %p958_p7 = pnand %p957_p5, %p1260_p10 }
 0x3a1   : > { %p963_p2 = por %p962_p11, %p961_p6 }
 0x3a2   : > { %p959_p1 = pneg %p958_p7 }
 0x3a4   : > { %p964_p9 = pnand %p963_p2, %p959_p1 }
 0x3a6   : > { %967 = shalt.err (!%p964_p9)
}
 0x3a7   : > { %s1132_s1 = smov 128   ;;  %s1620_s18 = sld [smem:[#allocation22_spill]] }
 0x3a8   : > { %s1133_s5 = smov 384   ;;  %s1134_s14 = smov 8  }
 0x3a9   : > { %729 = dma.vmem_to_hbm [thread:$0]  (%p1260_p10), %s1428_s25, 256, %s1433_s16, %s1437_s6, %s1132_s1, %s1133_s5, %s1134_s14  }
 0x3aa   : > { %s694_s9 = sshll.u32 %s1614_s8, 8  ;;  %s1621_s0 = sld [smem:[#allocation30_spill]] }
 0x3ab   : > { %s515_s10 = sshll.u32 %s1396_s2, 4  ;;  %s484_s13 = scalar_lea.sflag [#allocation11], %s1366_s11  ;;  %s1469_s10 = int_to_ptr.vmem [resolvable:$true] %s515_s10 }
 0x3ac   : > { %s968_s30 = scalar_lea.vmem %s1469_s10, 256  ;;  %s1135_s21 = smov [#allocation10]  }
 0x3ad   : > { %p969_p13 = scmp.ne.s32.totalorder %s1469_s10, %s968_s30  ;;  %p1622_p3 = scmp.ne.s32.totalorder %s1620_s18, 0 }
 0x3ae   : > { %s972_s25 = sshll.u32 %s1135_s21, 4  ;;  %s973_s25 = int_to_ptr.vmem [resolvable:$false] %s972_s25 }
 0x3af   : > { %p970_p8 = pnand %p969_p13, %p1622_p3  ;;  %s974_s8 = scalar_lea.vmem %s973_s25, 512 }
 0x3b0   : > { %s1466_s24 = scalar_lea.hbm %s1621_s0, %s694_s9  ;;  %p975_p10 = scmp.lt.s32.totalorder %s1469_s10, %s973_s25 }
 0x3b1   : > { %p971_p0 = pneg %p970_p8  ;;  %p976_p4 = scmp.lt.s32.totalorder %s974_s8, %s968_s30 }
 0x3b3   : > { %p977_p12 = por %p976_p4, %p975_p10 }
 0x3b5   : > { %p978_p5 = pnand %p977_p12, %p971_p0 }
 0x3b7   : > { %981 = shalt.err (!%p978_p5)
}
 0x3b8   : > { %s982_s2 = scalar_lea.hbm %s1466_s24, 256  ;;  %s986_s6 = scalar_lea.hbm %s1621_s0, 512 }
 0x3b9   : > { %p983_p7 = scmp.ne.s32.totalorder %s1466_s24, %s982_s2  ;;  %p987_p11 = scmp.lt.s32.totalorder %s1466_s24, %s1621_s0 }
 0x3ba   : > { %p988_p2 = scmp.lt.s32.totalorder %s986_s6, %s982_s2 }
 0x3bb   : > { %p984_p1 = pnand %p983_p7, %p1622_p3 }
 0x3bc   : > { %p989_p9 = por %p988_p2, %p987_p11 }
 0x3bd   : > { %p985_p6 = pneg %p984_p1 }
 0x3bf   : > { %p990_p13 = pnand %p989_p9, %p985_p6 }
 0x3c1   : > { %993 = shalt.err (!%p990_p13)
}
 0x3c2   : > { %730 = dma.vmem_to_hbm [thread:$0]  (%p1622_p3), %s1469_s10, 256, %s1466_s24, %s484_s13, %s1132_s1, %s1132_s1, %s1134_s14  }
 0x3c3 PF: > { %s1623_s30 = sld [smem:[#allocation16_spill]]  ;;  %p748_p8 = scmp.ge.s32.totalorder %s1120_s28, 2 }
 0x3c4   : > { %s1624_s12 = sld [smem:[#allocation23_spill]] }
 0x3c9   : > { %s530_s15 = sand.u32 1, %s1623_s30  }
 0x3ca   : > { %p1625_p0 = scmp.ne.s32.totalorder %s1624_s12, 0  ;;  %s531_s21 = scalar_lea.sflag [#allocation6], %s530_s15 }
 0x3cc   : > { %p741_p10 = pnand %p748_p8, %p1625_p0 }
 0x3ce   : > { %p742_p4 = pneg %p741_p10 }
 0x3d0   : > { %1059 = dma.done.wait (%p742_p4), %s531_s21, 256  }
 0x3d1   : > { %1061 = vsyncadd (%p742_p4), %s531_s21, 4294967040  ;;  %s1626_s25 = sld [smem:[#allocation18_spill]] }
 0x3d2   : > { %s1627_s18 = sld [smem:[#allocation24_spill]] }
 0x3d7   : > { %s539_s8 = sand.u32 1, %s1626_s25  }
 0x3d8   : > { %p1628_p12 = scmp.ne.s32.totalorder %s1627_s18, 0  ;;  %s540_s2 = scalar_lea.sflag [#allocation11], %s539_s8 }
 0x3da   : > { %p744_p5 = pnand %p748_p8, %p1628_p12 }
 0x3dc   : > { %p745_p7 = pneg %p744_p5 }
 0x3de   : > { %1063 = dma.done.wait (%p745_p7), %s540_s2, 256  }
 0x3df   : > { %1065 = vsyncadd (%p745_p7), %s540_s2, 4294967040  ;;  %s27_s28 = sadd.s32 1, %s1120_s28   ;;  %s1630_s15 = sld [smem:[#allocation17_spill]] }
 0x3e0   : > { %p1503_p3 = scmp.ge.s32.totalorder %s27_s28, 8   ;;  %s1631_s14 = sld [smem:[#allocation25_spill]] }
 0x3e1   : > { %s1632_s16 = smov %s1076_s17  ;;  %s1633_s17 = smov %s1343_s7 }
 0x3e2   : > { %s1634_s18 = smov %s1084_s19  ;;  %s1635_s19 = smov %s1088_s20 }
 0x3e3   : > { %s1636_s20 = smov %s1332_s29  ;;  %s1637_s21 = smov %s1096_s22 }
 0x3e4   : > { %s1638_s22 = smov %s1100_s23  ;;  %s1639_s23 = smov %s1340_s3 }
 0x3e5   : > { %s1640_s24 = smov %s1112_s26  ;;  %s1641_s25 = smov %s1116_s27 }
 0x3e6   : > { %s1642_s26 = smov %s1631_s14  ;;  %s1643_s27 = smov %s1649_s4 }
 0x3e7   :  { %26 = sbr.rel (!%p1503_p3) target bundleno = 20 (0x14), region = 118 }
 0x3ec   :  { %545 = vsyncpa [#allocation5], 1 }
 0x3ed   :  { %547 = vsyncpa [#allocation5 + $0x1], 1 }
 0x3ee   :  { %548 = vsyncpa [#allocation8], 1 }
 0x3ef   :  { %550 = vsyncpa [#allocation8 + $0x1], 1 }
 0x3f0   :  { %551 = vsyncpa [#allocation6], 1 }
 0x3f1   :  { %553 = vsyncpa [#allocation6 + $0x1], 1 }
 0x3f2   :  { %554 = vsyncpa [#allocation11], 1 }
 0x3f3   :  { %556 = vsyncpa [#allocation11 + $0x1], 1 }

</bundles_post_ra>
